<compile_context>
chip_gen: v7x
topology: tpu7x:2x2x1
jax: 0.10.0
libtpu: 0.0.40
codegen_flags: <defaults>
</compile_context>

<pallas_src>
import functools
import math

import jax
import jax.numpy as jnp
from jax.experimental import pallas as pl
from jax.experimental.pallas import tpu as pltpu

_MASK = -1e30  # large finite negative: safe even if fully-masked rows ever appear
_VMEM_LIMIT = 48 * 1024 * 1024  # fits v7x's 64 MiB/TC; can raise toward ~100 MiB on v5e/v6e


def _pick_block(n, target):
    """Largest tile <= target that divides n (multiple of 8), else n itself."""
    if n <= target:
        return n
    for cand in (256, 128, 64, 32, 16, 8):
        if cand <= target and n % cand == 0:
            return cand
    return n


# ----------------------------------------------------------------------------
# Kernel 1: fused q/k/v projection + RoPE over row blocks of (B*T, C).
# ----------------------------------------------------------------------------
def _proj_rope_kernel(x_ref, w_ref, cos_ref, sin_ref, q_ref, k_ref, v_ref):
    """x_ref (tm, C) ; w_ref (C, 5C) = [Wq*s | rot(Wq)*s | Wk | rot(Wk) | Wv] ;
    cos_ref/sin_ref (tm, D) compact tables ; outputs (tm, C) in compute dtype."""
    C = q_ref.shape[-1]
    H = C // cos_ref.shape[-1]  # n_head

    # One fused MXU projection (f32 accumulation).
    p = jnp.dot(x_ref[...], w_ref[...], preferred_element_type=jnp.float32)  # (tm, 5C)

    # Tile the compact per-head cos/sin across heads once (lane replicate).
    cos = jnp.concatenate([cos_ref[...]] * H, axis=-1)  # (tm, C)
    sin = jnp.concatenate([sin_ref[...]] * H, axis=-1)

    # rotate_half is already folded into the weight columns -> RoPE = one FMA pass.
    q_ref[...] = (p[:, :C] * cos + p[:, C:2 * C] * sin).astype(q_ref.dtype)
    k_ref[...] = (p[:, 2 * C:3 * C] * cos + p[:, 3 * C:4 * C] * sin).astype(k_ref.dtype)
    v_ref[...] = p[:, 4 * C:].astype(v_ref.dtype)


# ----------------------------------------------------------------------------
# Kernel 2: flash attention (online softmax) + fused output projection.
# grid = (B, T // block_q, T // block_k); kv axis innermost ("arbitrary").
# ----------------------------------------------------------------------------
def _flash_attn_kernel(q_ref, k_ref, v_ref, wc3_ref, o_ref, m_sc, l_sc, acc_sc):
    """q_ref (1,H,tq,D) pre-scaled RoPE'd queries ; k_ref/v_ref (1,H,tk,D) kv tile ;
    wc3_ref (H,D,C) per-head c_proj slabs ; o_ref (1,tq,C) ;
    m/l (H,tq,1) and acc (H,tq,D) f32 scratch accumulators."""
    qi = pl.program_id(1)
    kv = pl.program_id(2)
    n_kv = pl.num_programs(2)
    block_q = q_ref.shape[2]
    block_k = k_ref.shape[2]

    @pl.when(kv == 0)
    def _init():
        m_sc[...] = jnp.full(m_sc.shape, _MASK, m_sc.dtype)
        l_sc[...] = jnp.zeros(l_sc.shape, l_sc.dtype)
        acc_sc[...] = jnp.zeros(acc_sc.shape, acc_sc.dtype)

    # Causal tile skip: this kv block contributes iff its first key index is
    # <= the last query index of this q block (~halves score/exp/PV work).
    @pl.when(kv * block_k <= qi * block_q + (block_q - 1))
    def _accumulate():
        q = q_ref[0]                      # (H, tq, D), compute dtype
        k = k_ref[0]                      # (H, tk, D)
        v = v_ref[0]
        # 1/sqrt(d_head) already folded into q's weight columns.
        s = jnp.einsum("hqd,hkd->hqk", q, k,
                       preferred_element_type=jnp.float32)       # (H, tq, tk)

        # Additive causal bias (only diagonal tiles actually clip anything).
        q_idx = qi * block_q + jax.lax.broadcasted_iota(jnp.int32, (block_q, block_k), 0)
        k_idx = kv * block_k + jax.lax.broadcasted_iota(jnp.int32, (block_q, block_k), 1)
        bias = jnp.where(k_idx <= q_idx, 0.0, _MASK).astype(jnp.float32)
        s = s + bias[None]

        m_prev = m_sc[...]
        m_new = jnp.maximum(m_prev, jnp.max(s, axis=-1, keepdims=True))
        alpha = jnp.exp(m_prev - m_new)
        p = jnp.exp(s - m_new)            # f32; TODO(synk): bf16 exp on v6e/v7x
        l_sc[...] = alpha * l_sc[...] + jnp.sum(p, axis=-1, keepdims=True)
        acc_sc[...] = alpha * acc_sc[...] + jnp.einsum(
            "hqk,hkd->hqd", p.astype(v.dtype), v,
            preferred_element_type=jnp.float32)
        m_sc[...] = m_new

    @pl.when(kv == n_kv - 1)
    def _finalize():
        # Deferred normalization on the small (H, tq, D) accumulator (EUP slot).
        ctx = acc_sc[...] * pl.reciprocal(l_sc[...], approx=True)
        # c_proj folded in: concat_h(ctx_h) @ Wc^T == sum_h ctx_h @ Wc3[h]
        # (avoids any in-kernel head transpose; H is small and static).
        mm_dtype = q_ref.dtype
        n_head = wc3_ref.shape[0]
        out = jnp.zeros((block_q, wc3_ref.shape[-1]), jnp.float32)
        for h in range(n_head):
            out = out + jnp.dot(ctx[h].astype(mm_dtype), wc3_ref[h],
                                preferred_element_type=jnp.float32)
        o_ref[0] = out.astype(o_ref.dtype)


# ----------------------------------------------------------------------------
# Wrapper-side (hoistable) weight prep, RoPE tables, and the forward.
# ----------------------------------------------------------------------------
def llama_rope_tables(seq_len, d_head, base=10000.0, dtype=jnp.float32):
    """LlamaRotaryEmbedding (no scaling): cos/sin of shape (seq_len, d_head)."""
    inv_freq = 1.0 / (base ** (jnp.arange(0, d_head, 2, dtype=jnp.float32) / d_head))
    t = jnp.arange(seq_len, dtype=jnp.float32)
    freqs = jnp.outer(t, inv_freq)
    emb = jnp.concatenate([freqs, freqs], axis=-1)
    return jnp.cos(emb).astype(dtype), jnp.sin(emb).astype(dtype)


def _rotate_half_columns(w_t, d_head):
    """w_rot_t such that x @ w_rot_t == rotate_half_per_head(x @ w_t)."""
    c_out = w_t.shape[1]
    half = d_head // 2
    j = jnp.arange(c_out)
    pos = j % d_head
    head = j // d_head
    src = jnp.where(pos < half, head * d_head + pos + half, head * d_head + pos - half)
    sign = jnp.where(pos < half, -1.0, 1.0).astype(w_t.dtype)
    return w_t[:, src] * sign[None, :]


def prepare_params(wq, wkv, wc, *, n_head, d_head, compute_dtype=jnp.bfloat16):
    """One-time weight prep (hoist out of the per-call forward): transpose to
    (in,out), fold rotate_half + 1/sqrt(d_head) scale into the projection columns,
    reshape c_proj into per-head slabs, cast to the MXU compute dtype."""
    C = n_head * d_head
    scale = 1.0 / math.sqrt(d_head)
    wq_t = wq.T * scale                                  # scale folded into q columns
    wk_t = wkv[:C, :].T
    wv_t = wkv[C:, :].T
    w_fused = jnp.concatenate(
        [wq_t, _rotate_half_columns(wq_t, d_head),
         wk_t, _rotate_half_columns(wk_t, d_head),
         wv_t], axis=1).astype(compute_dtype)            # (C, 5C)
    wc3 = wc.T.reshape(n_head, d_head, C).astype(compute_dtype)   # (H, D, C)
    return {"w_fused": w_fused, "wc3": wc3,
            "n_head": n_head, "d_head": d_head, "compute_dtype": compute_dtype}


def causal_self_attention(x, params, *, rope_base=10000.0, out_dtype=jnp.float32,
                          block_q=None, block_k=None):
    """Forward of QuantizedCausalSelfAttention (use_kv_cache=False, eval mode).
    x: (B, T, C) float32 with C = n_head * d_head; params from prepare_params."""
    B, T, C = x.shape
    H, D = params["n_head"], params["d_head"]
    cdt = params["compute_dtype"]
    assert C == H * D

    # --- Stage 1: fused projection + RoPE over flattened (B*T, C) rows.
    cos, sin = llama_rope_tables(T, D, base=rope_base)   # compact (T, D)
    cos_flat = jnp.tile(cos, (B, 1))                     # (B*T, D), tiny
    sin_flat = jnp.tile(sin, (B, 1))
    x_flat = x.reshape(B * T, C).astype(cdt)

    tm = _pick_block(B * T, 256)
    q_flat, k_flat, v_flat = pl.pallas_call(
        _proj_rope_kernel,
        out_shape=tuple(jax.ShapeDtypeStruct((B * T, C), cdt) for _ in range(3)),
        grid=(B * T // tm,),
        in_specs=[
            pl.BlockSpec((tm, C), lambda i: (i, 0)),
            pl.BlockSpec((C, 5 * C), lambda i: (0, 0),
                         pipeline_mode=pl.Buffered(1)),       # grid-invariant weight
            pl.BlockSpec((tm, D), lambda i: (i, 0)),
            pl.BlockSpec((tm, D), lambda i: (i, 0)),
        ],
        out_specs=tuple(pl.BlockSpec((tm, C), lambda i: (i, 0)) for _ in range(3)),
        compiler_params=pltpu.CompilerParams(
            dimension_semantics=("parallel",),
            vmem_limit_bytes=_VMEM_LIMIT),
    )(x_flat, params["w_fused"], cos_flat, sin_flat)

    # --- Stage 2: head split as one XLA layout transpose (lane-dense kernel blocks).
    def to_heads(u):
        return u.reshape(B, T, H, D).transpose(0, 2, 1, 3)    # (B, H, T, D)

    qh, kh, vh = to_heads(q_flat), to_heads(k_flat), to_heads(v_flat)

    # --- Stage 3: flash attention + fused c_proj.
    tq = block_q or _pick_block(T, 128)
    tk = block_k or _pick_block(T, 128)

    return pl.pallas_call(
        _flash_attn_kernel,
        out_shape=jax.ShapeDtypeStruct((B, T, C), out_dtype),
        grid=(B, T // tq, T // tk),
        in_specs=[
            pl.BlockSpec((1, H, tq, D), lambda b, qi, kv: (b, 0, qi, 0)),
            pl.BlockSpec((1, H, tk, D), lambda b, qi, kv: (b, 0, kv, 0)),
            pl.BlockSpec((1, H, tk, D), lambda b, qi, kv: (b, 0, kv, 0)),
            pl.BlockSpec((H, D, C), lambda b, qi, kv: (0, 0, 0),
                         pipeline_mode=pl.Buffered(1)),       # grid-invariant weight
        ],
        out_specs=pl.BlockSpec((1, tq, C), lambda b, qi, kv: (b, qi, 0)),
        scratch_shapes=[
            pltpu.VMEM((H, tq, 1), jnp.float32),   # running max
            pltpu.VMEM((H, tq, 1), jnp.float32),   # running denom
            pltpu.VMEM((H, tq, D), jnp.float32),   # unnormalized context
        ],
        compiler_params=pltpu.CompilerParams(
            dimension_semantics=("parallel", "parallel", "arbitrary"),
            vmem_limit_bytes=_VMEM_LIMIT),
    )(qh, kh, vh, params["wc3"])


def reference_jax(x, wq, wkv, wc, n_head, d_head, rope_base=10000.0):
    """Pure-JAX f32 reference mirroring the PyTorch forward (use_kv_cache=False)."""
    B, T, C = x.shape
    q = x @ wq.T
    kv = x @ wkv.T
    k, v = kv[..., :C], kv[..., C:]

    def to_heads(u):
        return u.reshape(B, T, n_head, d_head).transpose(0, 2, 1, 3)

    q, k, v = to_heads(q), to_heads(k), to_heads(v)
    cos, sin = llama_rope_tables(T, d_head, base=rope_base)
    half = d_head // 2

    def rope(u):
        rot = jnp.concatenate([-u[..., half:], u[..., :half]], axis=-1)
        return u * cos[None, None] + rot * sin[None, None]

    q, k = rope(q), rope(k)
    scores = jnp.einsum("bhqd,bhkd->bhqk", q, k) / math.sqrt(d_head)
    mask = jnp.tril(jnp.ones((T, T), dtype=bool))
    scores = jnp.where(mask[None, None], scores, -jnp.inf)
    p = jax.nn.softmax(scores, axis=-1)
    y = jnp.einsum("bhqk,bhkd->bhqd", p, v)
    y = y.transpose(0, 2, 1, 3).reshape(B, T, C)
    return y @ wc.T


if __name__ == "__main__":
    # Small config consistent with the module: n_head=4, n_embd_per_head=8 -> C=32.
    B, T = 2, 8
    n_head, d_head = 4, 8
    C = n_head * d_head

    key = jax.random.PRNGKey(0)
    kx, kq, kkv, kc = jax.random.split(key, 4)
    x = jax.random.normal(kx, (B, T, C), dtype=jnp.float32)
    w_scale = 0.1
    wq = w_scale * jax.random.normal(kq, (C, C), dtype=jnp.float32)
    wkv = w_scale * jax.random.normal(kkv, (2 * C, C), dtype=jnp.float32)
    wc = w_scale * jax.random.normal(kc, (C, C), dtype=jnp.float32)

    ref = reference_jax(x, wq, wkv, wc, n_head, d_head)

    # f32 check path: exercises the kernel math (weight-folded RoPE/scale, flash
    # online softmax, fused per-head c_proj) without bf16 rounding.
    p32 = prepare_params(wq, wkv, wc, n_head=n_head, d_head=d_head,
                         compute_dtype=jnp.float32)
    out_f32 = jax.block_until_ready(causal_self_attention(x, p32))
    assert out_f32.shape == (B, T, C)
    assert jnp.allclose(out_f32, ref, atol=1e-2, rtol=1e-2), "f32 kernel mismatch"

    # bf16 MXU perf path (default compute dtype).
    p16 = prepare_params(wq, wkv, wc, n_head=n_head, d_head=d_head)
    out_bf16 = jax.block_until_ready(causal_self_attention(x, p16))
    assert out_bf16.shape == (B, T, C)
    assert jnp.allclose(out_bf16, ref, atol=5e-2, rtol=5e-2), "bf16 kernel mismatch"

    # Multi-tile path: exercises the online-softmax accumulation and causal
    # kv-tile skipping across several q/kv blocks (still a small problem).
    B2, T2 = 1, 256
    x2 = jax.random.normal(jax.random.PRNGKey(1), (B2, T2, C), dtype=jnp.float32)
    ref2 = reference_jax(x2, wq, wkv, wc, n_head, d_head)
    out2 = jax.block_until_ready(
        causal_self_attention(x2, p32, block_q=128, block_k=64))
    assert jnp.allclose(out2, ref2, atol=1e-2, rtol=1e-2), "multi-tile kernel mismatch"

    print("KERNEL_OK")
</pallas_src>

<mosaic_0001>
module attributes {stable_mosaic.version = 11 : i64} {
  func.func @_proj_rope_kernel(%arg0: i32, %arg1: memref<16x32xf32, #tpu.memory_space<vmem>>, %arg2: memref<32x160xf32, #tpu.memory_space<vmem>>, %arg3: memref<16x8xf32, #tpu.memory_space<vmem>>, %arg4: memref<16x8xf32, #tpu.memory_space<vmem>>, %arg5: memref<16x32xf32, #tpu.memory_space<vmem>>, %arg6: memref<16x32xf32, #tpu.memory_space<vmem>>, %arg7: memref<16x32xf32, #tpu.memory_space<vmem>>) attributes {dimension_semantics = [#tpu.dimension_semantics<parallel>], iteration_bounds = array<i64: 1>, scalar_prefetch = 0 : i64, scratch_operands = 0 : i64, tpu.core_type = #tpu.core_type<tc>, window_params = [{transform_indices = @transform_0, window_bounds = array<i64: 16, 32>}, {pipeline_mode = #tpu.pipeline_mode<synchronous>, transform_indices = @transform_1, window_bounds = array<i64: 32, 160>}, {transform_indices = @transform_2, window_bounds = array<i64: 16, 8>}, {transform_indices = @transform_3, window_bounds = array<i64: 16, 8>}, {transform_indices = @transform_4, window_bounds = array<i64: 16, 32>}, {transform_indices = @transform_5, window_bounds = array<i64: 16, 32>}, {transform_indices = @transform_6, window_bounds = array<i64: 16, 32>}]} {
    %c0 = arith.constant 0 : index
    %c0_0 = arith.constant 0 : index
    %0 = vector.load %arg1[%c0, %c0_0] : memref<16x32xf32, #tpu.memory_space<vmem>>, vector<16x32xf32>
    %c0_1 = arith.constant 0 : index
    %c0_2 = arith.constant 0 : index
    %1 = vector.load %arg2[%c0_1, %c0_2] : memref<32x160xf32, #tpu.memory_space<vmem>>, vector<32x160xf32>
    %cst = arith.constant dense<0.000000e+00> : vector<16x160xf32>
    %2 = tpu.matmul %0, %1, %cst {dimension_numbers = #tpu.dot_dimension_numbers<[1], [0], [0], [1], [0, 0, 1, 1], [], []>} : vector<16x32xf32>, vector<32x160xf32>, vector<16x160xf32> -> vector<16x160xf32>
    %c0_3 = arith.constant 0 : index
    %c0_4 = arith.constant 0 : index
    %3 = vector.load %arg3[%c0_3, %c0_4] : memref<16x8xf32, #tpu.memory_space<vmem>>, vector<16x8xf32>
    %4 = tpu.concatenate %3, %3, %3, %3 in 1 : vector<16x8xf32>, vector<16x8xf32>, vector<16x8xf32>, vector<16x8xf32> -> vector<16x32xf32>
    %c0_5 = arith.constant 0 : index
    %c0_6 = arith.constant 0 : index
    %5 = vector.load %arg4[%c0_5, %c0_6] : memref<16x8xf32, #tpu.memory_space<vmem>>, vector<16x8xf32>
    %6 = tpu.concatenate %5, %5, %5, %5 in 1 : vector<16x8xf32>, vector<16x8xf32>, vector<16x8xf32>, vector<16x8xf32> -> vector<16x32xf32>
    %7 = vector.extract_strided_slice %2 {offsets = [0, 0], sizes = [16, 32], strides = [1, 1]} : vector<16x160xf32> to vector<16x32xf32>
    %8 = arith.mulf %7, %4 : vector<16x32xf32>
    %9 = vector.extract_strided_slice %2 {offsets = [0, 32], sizes = [16, 32], strides = [1, 1]} : vector<16x160xf32> to vector<16x32xf32>
    %10 = arith.mulf %9, %6 : vector<16x32xf32>
    %11 = arith.addf %8, %10 : vector<16x32xf32>
    %c0_7 = arith.constant 0 : index
    %c0_8 = arith.constant 0 : index
    %12 = vector.load %arg5[%c0_7, %c0_8] : memref<16x32xf32, #tpu.memory_space<vmem>>, vector<16x32xf32>
    tpu.vector_store %arg5[%c0_7, %c0_8], %11 {strides = array<i32>} : memref<16x32xf32, #tpu.memory_space<vmem>>, vector<16x32xf32>,
    %13 = vector.extract_strided_slice %2 {offsets = [0, 64], sizes = [16, 32], strides = [1, 1]} : vector<16x160xf32> to vector<16x32xf32>
    %14 = arith.mulf %13, %4 : vector<16x32xf32>
    %15 = vector.extract_strided_slice %2 {offsets = [0, 96], sizes = [16, 32], strides = [1, 1]} : vector<16x160xf32> to vector<16x32xf32>
    %16 = arith.mulf %15, %6 : vector<16x32xf32>
    %17 = arith.addf %14, %16 : vector<16x32xf32>
    %c0_9 = arith.constant 0 : index
    %c0_10 = arith.constant 0 : index
    %18 = vector.load %arg6[%c0_9, %c0_10] : memref<16x32xf32, #tpu.memory_space<vmem>>, vector<16x32xf32>
    tpu.vector_store %arg6[%c0_9, %c0_10], %17 {strides = array<i32>} : memref<16x32xf32, #tpu.memory_space<vmem>>, vector<16x32xf32>,
    %19 = vector.extract_strided_slice %2 {offsets = [0, 128], sizes = [16, 32], strides = [1, 1]} : vector<16x160xf32> to vector<16x32xf32>
    %c0_11 = arith.constant 0 : index
    %c0_12 = arith.constant 0 : index
    %20 = vector.load %arg7[%c0_11, %c0_12] : memref<16x32xf32, #tpu.memory_space<vmem>>, vector<16x32xf32>
    tpu.vector_store %arg7[%c0_11, %c0_12], %19 {strides = array<i32>} : memref<16x32xf32, #tpu.memory_space<vmem>>, vector<16x32xf32>,
    return
  }
  func.func @transform_0(%arg0: i32) -> (i32, i32) {
    %c0_i32 = arith.constant 0 : i32
    %c0_i32_0 = arith.constant 0 : i32
    return %arg0, %c0_i32 : i32, i32
  }
  func.func @transform_1(%arg0: i32) -> (i32, i32) {
    %c0_i32 = arith.constant 0 : i32
    %c0_i32_0 = arith.constant 0 : i32
    %c0_i32_1 = arith.constant 0 : i32
    return %c0_i32, %c0_i32_0 : i32, i32
  }
  func.func @transform_2(%arg0: i32) -> (i32, i32) {
    %c0_i32 = arith.constant 0 : i32
    %c0_i32_0 = arith.constant 0 : i32
    return %arg0, %c0_i32 : i32, i32
  }
  func.func @transform_3(%arg0: i32) -> (i32, i32) {
    %c0_i32 = arith.constant 0 : i32
    %c0_i32_0 = arith.constant 0 : i32
    return %arg0, %c0_i32 : i32, i32
  }
  func.func @transform_4(%arg0: i32) -> (i32, i32) {
    %c0_i32 = arith.constant 0 : i32
    %c0_i32_0 = arith.constant 0 : i32
    return %arg0, %c0_i32 : i32, i32
  }
  func.func @transform_5(%arg0: i32) -> (i32, i32) {
    %c0_i32 = arith.constant 0 : i32
    %c0_i32_0 = arith.constant 0 : i32
    return %arg0, %c0_i32 : i32, i32
  }
  func.func @transform_6(%arg0: i32) -> (i32, i32) {
    %c0_i32 = arith.constant 0 : i32
    %c0_i32_0 = arith.constant 0 : i32
    return %arg0, %c0_i32 : i32, i32
  }
}

</mosaic_0001>

<bundles_post_ra>
// kernel: tpu_custom_call.1
= control target key start
LH: loop header
LB: loop body
LE: loop exit
PB: predicated region body
PF: predicated region fallthrough
CT: control target
= control target key end

     0   :  { %12 = vsyncpa [#allocation3], 0  ;;  %s591_s0 = inlined_call_operand.vmem [shape: f32[16,32], index: 0, kind: input, shape index: {}]   ;;  %s592_s1 = inlined_call_operand.hbm [shape: f32[32,160], index: 1, kind: input, shape index: {}]   ;;  %s593_s2 = inlined_call_operand.vmem [shape: f32[16,8], index: 2, kind: input, shape index: {}]   ;;  %s594_s3 = inlined_call_operand.vmem [shape: f32[16,8], index: 3, kind: input, shape index: {}]   ;;  %s595_s4 = inlined_call_operand.hbm [shape: f32[16,32], index: 4, kind: output, shape index: {0}]   ;;  %s596_s5 = inlined_call_operand.hbm [shape: f32[16,32], index: 5, kind: output, shape index: {1}]   ;;  %s597_s6 = inlined_call_operand.hbm [shape: f32[16,32], index: 6, kind: output, shape index: {2}]  }
   0x1   :  { %13 = vsyncpa [#allocation4], 0 }
   0x2   :  { %14 = vsyncpa [#allocation7], 0  ;;  %s422_s21 = smov [#allocation2]   ;;  %s328_s25 = scalar_lea.hbm %s592_s1, 1024 }
   0x3   :  { %s22_s22 = sshll.u32 %s422_s21, 4  ;;  %p329_p0 = scmp.ne.s32.totalorder %s592_s1, %s328_s25  ;;  %s23_s22 = int_to_ptr.vmem [resolvable:$true] %s22_s22 }
   0x4   :  { %p332_p1 = scmp.lt.u32.totalorder %s328_s25, %s592_s1 }
   0x6   :  { %p334_p2 = pnand %p332_p1, %p329_p0 }
   0x8   :  { %337 = shalt.err (!%p334_p2)
}
   0x9   :  { %s338_s30 = scalar_lea.vmem %s23_s22, 1024  ;;  %p343_p4 = scmp.lt.s32.totalorder %s23_s22, %s23_s22 }
   0xa   :  { %p339_p3 = scmp.ne.s32.totalorder %s23_s22, %s338_s30  ;;  %p344_p5 = scmp.lt.s32.totalorder %s338_s30, %s338_s30 }
   0xc   :  { %p345_p6 = por %p344_p5, %p343_p4 }
   0xe   :  { %p346_p7 = pnand %p345_p6, %p339_p3 }
  0x10   :  { %349 = shalt.err (!%p346_p7)
}
  0x11   :  { %s423_s7 = smov 256   ;;  %s424_s8 = smov 16  }
  0x12   :  { %28 = dma.hbm_to_vmem [thread:$0]  %s592_s1, 1024, %s23_s22, [#allocation3], %s423_s7, %s423_s7, %s424_s8  }
  0x13   :  { %416 = dma.done.wait [#allocation3], 1024  }
  0x14   :  { %417 = vsyncadd [#allocation3], 4294966272  ;;  %v425_v0 = vmov 0.0   ;;  %v161_v1 = vld [vmem:[%s594_s3] sm:$0xff]  ;;  %v39_v2 = vld [vmem:[#allocation2 + $0x8] sm:$0xff]  ;;  %s426_s13 = smov 8  }
  0x15   :  { %117 = vmatprep.mubr.f32.mxu0 %v425_v0  ;;  %123 = vmatprep.mubr.f32.mxu1 %v425_v0  ;;  %v41_v3 = vld [vmem:[#allocation2 + $0x18] sm:$0xff]  ;;  %v38_v4 = vld [vmem:[#allocation2] sm:$0xff]  ;;  %v40_v5 = vld [vmem:[#allocation2 + $0x10] sm:$0xff]  ;;  %s427_s15 = smov 24   ;;  %vm46_vm0 = vcmask 261120   ;;  %vm152_vm1 = vcmask 64512  }
  0x16   :  { %171 = vrot.lane.b32.xlu1 %v161_v1, %s424_s8  ;;  %165 = vrot.lane.b32.xlu0 %v161_v1, %s426_s13  ;;  %v162_v6 = vld [vmem:[%s594_s3 + $0x8] sm:$0xff]  ;;  %v303_v7 = vpack.c.bf16 %v41_v3, %v39_v2  ;;  %v305_v8 = vpack.c.bf16 %v40_v5, %v38_v4  ;;  %v45_v10 = vld [vmem:[#allocation2 + $0x38] sm:$0xff]  ;;  %v42_v12 = vld [vmem:[#allocation2 + $0x20] sm:$0xff]  ;;  %vm155_vm2 = vcmask 130048   ;;  %vm158_vm3 = vcmask 195584   ;;  %s430_s23 = smov 32  }
  0x17   :  { %v43_v9 = vld [vmem:[#allocation2 + $0x28] sm:$0xff]  ;;  %v44_v13 = vld [vmem:[#allocation2 + $0x30] sm:$0xff]  ;;  %v130_v16 = vld [vmem:[%s593_s2] sm:$0xff]  ;;  %s431_s24 = smov [#allocation5]  }
  0x18   :  { %v307_v11 = vpack.c.bf16 %v45_v10, %v43_v9  ;;  %304 = vmatprep.subr.bf16.mxu0 %v303_v7  ;;  %311 = vmatprep.subr.bf16.mxu1 %v303_v7  ;;  %v309_v14 = vpack.c.bf16 %v44_v13, %v42_v12  ;;  %v131_v15 = vld [vmem:[%s593_s2 + $0x8] sm:$0xff]  ;;  %v36_v17 = vld [vmem:[%s591_s0] sm:$0xff]  ;;  %s429_s2 = smov 64   ;;  %s258_s25 = sshll.u32 %s431_s24, 4  ;;  %s259_s25 = int_to_ptr.vmem [resolvable:$true] %s258_s25 }
  0x19   :  { %306 = vmatpush1.bf16.msra.mxu0 %v305_v8  ;;  %313 = vmatpush1.bf16.msra.mxu1 %v305_v8  ;;  %v37_v18 = vld [vmem:[%s591_s0 + $0x8] sm:$0xff]  ;;  %s428_s0 = smov 96   ;;  %s350_s26 = scalar_lea.vmem %s259_s25, 256 }
  0x1a   :  { %173 = vrot.lane.b32.xlu1 %v162_v6, %s424_s8  ;;  %167 = vrot.lane.b32.xlu0 %v162_v6, %s426_s13  ;;  %p351_p8 = scmp.ne.s32.totalorder %s259_s25, %s350_s26  ;;  %p355_p9 = scmp.lt.s32.totalorder %s259_s25, %s259_s25 }
  0x1b   :  { %308 = vmatprep.subr.bf16.mxu0 %v307_v11  ;;  %312 = vmatprep.subr.bf16.mxu1 %v307_v11  ;;  %p356_p10 = scmp.lt.s32.totalorder %s350_s26, %s350_s26 }
  0x1d   :  { %310 = vmatpush1.bf16.msra.mxu0 %v309_v14  ;;  %314 = vmatpush1.bf16.msra.mxu1 %v309_v14  ;;  %p357_p11 = por %p356_p10, %p355_p9 }
  0x1e   :  { %179 = vrot.lane.b32.xlu1 %v162_v6, %s427_s15  ;;  %177 = vrot.lane.b32.xlu0 %v161_v1, %s427_s15 }
  0x1f   :  { %p358_p12 = pnand %p357_p11, %p351_p8 }
  0x20   :  { %301 = vmatmul.mubr.msk.f32.vlgmr.msra.gmra.mrb[0].mxu0 %vm46_vm0, %v36_v17  ;;  %302 = vmatmul.mubr.msk.f32.vlgmr.msra.gmra.mrb[0].mxu1 %vm46_vm0, %v37_v18 }
  0x22   :  { %136 = vrot.lane.b32.xlu1 %v131_v15, %s426_s13  ;;  %134 = vrot.lane.b32.xlu0 %v130_v16, %s426_s13 }
  0x26   :  { %142 = vrot.lane.b32.xlu1 %v131_v15, %s424_s8  ;;  %140 = vrot.lane.b32.xlu0 %v130_v16, %s424_s8 }
  0x2a   :  { %148 = vrot.lane.b32.xlu1 %v131_v15, %s427_s15  ;;  %146 = vrot.lane.b32.xlu0 %v130_v16, %s427_s15 }
  0x88   :  { %v172_v19 = vpop.permute.xlu1 %171  ;;  %v166_v20 = vpop.permute.xlu0 %165 }
  0x89   :  { %v183_v23 = vsel %vm152_vm1, %v161_v1, %v166_v20 }
  0x8a   :  { %v185_v28 = vsel %vm155_vm2, %v183_v23, %v172_v19 }
  0x8c   :  { %v174_v21 = vpop.permute.xlu1 %173  ;;  %v168_v22 = vpop.permute.xlu0 %167 }
  0x8d   :  { %v184_v24 = vsel %vm152_vm1, %v162_v6, %v168_v22 }
  0x8e   :  { %v186_v27 = vsel %vm155_vm2, %v184_v24, %v174_v21 }
  0x90   :  { %v180_v25 = vpop.permute.xlu1 %179  ;;  %v178_v26 = vpop.permute.xlu0 %177 }
  0x91   :  { %v188_v29 = vsel %vm158_vm3, %v186_v27, %v180_v25  ;;  %v187_v30 = vsel %vm158_vm3, %v185_v28, %v178_v26 }
  0x92   :  { %225 = vrot.lane.b32.xlu1 %v188_v29, %s428_s0  ;;  %223 = vrot.lane.b32.xlu0 %v187_v30, %s428_s0 }
  0x94   :  { %v137_v31 = vpop.permute.xlu1 %136  ;;  %v135_v32 = vpop.permute.xlu0 %134 }
  0x95   :  { %v154_v33 = vsel %vm152_vm1, %v131_v15, %v137_v31  ;;  %v153_v34 = vsel %vm152_vm1, %v130_v16, %v135_v32 }
  0x98   :  { %v143_v35 = vpop.permute.xlu1 %142  ;;  %v141_v36 = vpop.permute.xlu0 %140 }
  0x99   :  { %v157_v37 = vsel %vm155_vm2, %v154_v33, %v143_v35  ;;  %v156_v38 = vsel %vm155_vm2, %v153_v34, %v141_v36 }
  0x9c   :  { %v149_v39 = vpop.permute.xlu1 %148  ;;  %v147_v40 = vpop.permute.xlu0 %146 }
  0x9d   :  { %v160_v41 = vsel %vm158_vm3, %v157_v37, %v149_v39  ;;  %v159_v42 = vsel %vm158_vm3, %v156_v38, %v147_v40 }
  0x9e   :  { %217 = vrot.lane.b32.xlu1 %v160_v41, %s429_s2  ;;  %215 = vrot.lane.b32.xlu0 %v159_v42, %s429_s2 }
  0xa2   :  { %195 = vrot.lane.b32.xlu1 %v188_v29, %s430_s23  ;;  %193 = vrot.lane.b32.xlu0 %v187_v30, %s430_s23 }
  0xf3   :  { %v119_v43 = vpop.f32.mrb[0].mxu0  ;;  %v125_v44 = vpop.f32.mrb[0].mxu1 }
  0xf4   :  { %v121_v45 = vpop.f32.mrb[1].mxu0  ;;  %v127_v46 = vpop.f32.mrb[1].mxu1  ;;  %v190_v63 = vmul.f32 %v160_v41, %v125_v44  ;;  %v189_v0 = vmul.f32 %v159_v42, %v119_v43 }
  0xf5   :  { %251 = vst.msk [vmem:[#allocation8] sm:$0xff] %vm46_vm0, %v121_v45  ;;  %252 = vst.msk [vmem:[#allocation8 + $0x8] sm:$0xff] %vm46_vm0, %v127_v46 }
 0x104   :  { %v226_v47 = vpop.permute.xlu1 %225  ;;  %v224_v48 = vpop.permute.xlu0 %223 }
 0x105   :  { %v230_v49 = vmul.f32 %v226_v47, %v125_v44  ;;  %v229_v50 = vmul.f32 %v224_v48, %v119_v43 }
 0x107   :  { %235 = vrot.lane.b32.xlu1 %v230_v49, %s428_s0  ;;  %233 = vrot.lane.b32.xlu0 %v229_v50, %s428_s0 }
 0x110   :  { %v218_v51 = vpop.permute.xlu1 %217  ;;  %v216_v52 = vpop.permute.xlu0 %215 }
 0x111   :  { %v222_v53 = vmul.f32 %v218_v51, %v125_v44  ;;  %v221_v54 = vmul.f32 %v216_v52, %v119_v43 }
 0x114   :  { %v196_v55 = vpop.permute.xlu1 %195  ;;  %v194_v56 = vpop.permute.xlu0 %193 }
 0x115   :  { %v200_v57 = vmul.f32 %v196_v55, %v125_v44  ;;  %v199_v58 = vmul.f32 %v194_v56, %v119_v43 }
 0x117   :  { %205 = vrot.lane.b32.xlu1 %v200_v57, %s428_s0  ;;  %203 = vrot.lane.b32.xlu0 %v199_v58, %s428_s0 }
 0x179   :  { %v236_v59 = vpop.permute.xlu1 %235  ;;  %v234_v60 = vpop.permute.xlu0 %233 }
 0x17a   :  { %v240_v61 = vadd.f32 %v236_v59, %v222_v53  ;;  %v239_v62 = vadd.f32 %v234_v60, %v221_v54 }
 0x17c   :  { %245 = vrot.lane.b32.xlu1 %v240_v61, %s429_s2  ;;  %243 = vrot.lane.b32.xlu0 %v239_v62, %s429_s2 }
 0x189   :  { %v206_v1 = vpop.permute.xlu1 %205  ;;  %v204_v2 = vpop.permute.xlu0 %203 }
 0x18a   :  { %v210_v3 = vadd.f32 %v206_v1, %v190_v63  ;;  %v209_v4 = vadd.f32 %v204_v2, %v189_v0 }
 0x18c   :  { %212 = vst.msk [vmem:[#allocation5 + $0x8] sm:$0xff] %vm46_vm0, %v210_v3  ;;  %211 = vst.msk [vmem:[#allocation5] sm:$0xff] %vm46_vm0, %v209_v4 }
 0x18d   :  { %361 = shalt.err (!%p358_p12)
}
 0x18e   :  { %s362_s29 = scalar_lea.hbm %s595_s4, 256 }
 0x18f   :  { %p363_p13 = scmp.ne.s32.totalorder %s595_s4, %s362_s29  ;;  %p366_p0 = scmp.lt.u32.totalorder %s362_s29, %s595_s4 }
 0x191   :  { %p368_p1 = pnand %p366_p0, %p363_p13 }
 0x193   :  { %371 = shalt.err (!%p368_p1)
}
 0x194   :  { %s432_s10 = smov 128   ;;  %s433_s14 = smov [#allocation6]  }
 0x195   :  { %264 = dma.vmem_to_hbm [thread:$0]  %s259_s25, 256, %s595_s4, [#allocation4], %s432_s10, %s432_s10, %s426_s13  }
 0x196   :  { %s270_s1 = sshll.u32 %s433_s14, 4  ;;  %s434_s15 = smov [#allocation8]   ;;  %s271_s1 = int_to_ptr.vmem [resolvable:$true] %s270_s1 }
 0x197   :  { %s282_s3 = sshll.u32 %s434_s15, 4  ;;  %s372_s16 = scalar_lea.vmem %s271_s1, 256  ;;  %s552_s3 = int_to_ptr.vmem [resolvable:$true] %s282_s3 }
 0x198   :  { %p373_p2 = scmp.ne.s32.totalorder %s271_s1, %s372_s16  ;;  %p377_p3 = scmp.lt.s32.totalorder %s271_s1, %s271_s1 }
 0x199   :  { %p378_p4 = scmp.lt.s32.totalorder %s372_s16, %s372_s16 }
 0x19b   :  { %p379_p5 = por %p378_p4, %p377_p3 }
 0x19d   :  { %p380_p6 = pnand %p379_p5, %p373_p2 }
 0x1ee   :  { %v246_v5 = vpop.permute.xlu1 %245  ;;  %v244_v6 = vpop.permute.xlu0 %243 }
 0x1ef   :  { %250 = vst.msk [vmem:[#allocation6 + $0x8] sm:$0xff] %vm46_vm0, %v246_v5  ;;  %249 = vst.msk [vmem:[#allocation6] sm:$0xff] %vm46_vm0, %v244_v6 }
 0x1f0   :  { %383 = shalt.err (!%p380_p6)
}
 0x1f1   :  { %s384_s18 = scalar_lea.hbm %s596_s5, 256 }
 0x1f2   :  { %p385_p7 = scmp.ne.s32.totalorder %s596_s5, %s384_s18  ;;  %p388_p8 = scmp.lt.u32.totalorder %s384_s18, %s596_s5 }
 0x1f4   :  { %p390_p9 = pnand %p388_p8, %p385_p7 }
 0x1f6   :  { %393 = shalt.err (!%p390_p9)
}
 0x1f7   :  { %276 = dma.vmem_to_hbm [thread:$0]  %s271_s1, 256, %s596_s5, [#allocation7], %s432_s10, %s432_s10, %s426_s13  }
 0x1f8   :  { %s394_s23 = scalar_lea.vmem %s552_s3, 256  ;;  %p399_p11 = scmp.lt.s32.totalorder %s552_s3, %s552_s3 }
 0x1f9   :  { %p395_p10 = scmp.ne.s32.totalorder %s552_s3, %s394_s23  ;;  %p400_p12 = scmp.lt.s32.totalorder %s394_s23, %s394_s23 }
 0x1fb   :  { %p401_p13 = por %p400_p12, %p399_p11 }
 0x1fd   :  { %p402_p0 = pnand %p401_p13, %p395_p10 }
 0x1ff   :  { %405 = shalt.err (!%p402_p0)
}
 0x200   :  { %s406_s26 = scalar_lea.hbm %s597_s6, 256 }
 0x201   :  { %p407_p1 = scmp.ne.s32.totalorder %s597_s6, %s406_s26  ;;  %p410_p2 = scmp.lt.u32.totalorder %s406_s26, %s597_s6 }
 0x203   :  { %p412_p3 = pnand %p410_p2, %p407_p1 }
 0x205   :  { %415 = shalt.err (!%p412_p3)
}
 0x206   :  { %288 = dma.vmem_to_hbm [thread:$0]  %s552_s3, 256, %s597_s6, [#allocation7], %s432_s10, %s432_s10, %s426_s13  }
 0x207   :  { %418 = dma.done.wait [#allocation4], 256  }
 0x208   :  { %419 = vsyncadd [#allocation4], 4294967040 }
 0x209   :  { %420 = dma.done.wait [#allocation7], 512  }
 0x20a   :  { %421 = vsyncadd [#allocation7], 4294966784 }
 0x20b   :  { %298 = vsyncpa [#allocation3], 1 }
 0x20c   :  { %299 = vsyncpa [#allocation4], 1 }
 0x20d   :  { %300 = vsyncpa [#allocation7], 1 }

</bundles_post_ra>
